<compile_context>
chip_gen: v5e
topology: v5e:2x2
jax: 0.10.0
libtpu: 0.0.40
codegen_flags: <defaults>
</compile_context>

<pallas_src>
import math

import jax
import jax.numpy as jnp
from jax.experimental import pallas as pl
from jax.experimental.pallas import tpu as pltpu


# ---------------------------------------------------------------------------
# Kernel: fused im2col, stride-2 3x3 conv for one image, NHWC output.
# ---------------------------------------------------------------------------
def _conv3x3s2_kernel(x_ref, w_ref, b_ref, o_ref):
    """
    x_ref: (1, HP2, 2, WP2, 2*C_in) f32 -- phase-split, zero-padded input:
           x_ref[0, a, p, b, q*C_in + c] == x_padded[2a + p, 2b + q, c]
    w_ref: (9, C_in, CP)            bf16 -- tap-major weights, C_out padded to CP
    b_ref: (1, CP)                  f32
    o_ref: (1, HO, WO, CP)          f32  -- NHWC, CP a multiple of 128 (lane-dense)
    """
    _, ho, wo, cp = o_ref.shape
    c_in = w_ref.shape[1]

    acc = jnp.zeros((ho * wo, cp), dtype=jnp.float32)
    for tap in range(9):  # statically unrolled 3x3 taps -> 9 MXU dots
        i, j = tap // 3, tap % 3
        # padded input row 2*oy + i == 2*(oy + i//2) + (i % 2); same for columns,
        # with the column phase folded into the lane axis (q*C_in + c).
        patch = x_ref[0,
                      pl.ds(i // 2, ho),                 # output rows (static start)
                      i % 2,                             # row phase (static int)
                      pl.ds(j // 2, wo),                 # output cols (static start)
                      pl.ds((j % 2) * c_in, c_in)]       # col phase: static lane slice
        # (ho, wo, c_in) -> (ho*wo, c_in) merges 8-aligned leading dims: layout no-op.
        # Cast the MXU operand to the weights' dtype (bf16) for native MXU rate.
        lhs = patch.reshape(ho * wo, c_in).astype(w_ref.dtype)
        acc = acc + jnp.dot(lhs, w_ref[tap], preferred_element_type=jnp.float32)

    out = acc + b_ref[...]                               # f32 bias add, broadcast (1, CP)
    o_ref[0] = out.reshape(ho, wo, cp).astype(o_ref.dtype)


# ---------------------------------------------------------------------------
# Wrapper: Conv2d(C_in, C_out, kernel_size=3, stride=2, padding=1), NCHW in/out.
# ---------------------------------------------------------------------------
def downsample_forward(x, weight, bias, *, compute_dtype=jnp.bfloat16):
    """
    x:      (N, C_in, H, W)      float32
    weight: (C_out, C_in, 3, 3)  float32
    bias:   (C_out,)             float32
    returns (N, C_out, Ho, Wo)   float32  (same semantics as the PyTorch module)
    """
    n, c_in, h, w = x.shape
    c_out = weight.shape[0]
    ho = (h - 1) // 2 + 1
    wo = (w - 1) // 2 + 1

    # NHWC + spatial zero-pad of 1; pad extents up to even so the stride-2 phases
    # can be split with a free (row-major) reshape.
    hp = (h + 2) + ((h + 2) % 2)
    wp = (w + 2) + ((w + 2) % 2)
    x_nhwc = jnp.transpose(x, (0, 2, 3, 1))
    xpad = jnp.pad(x_nhwc, ((0, 0), (1, hp - h - 1), (1, wp - w - 1), (0, 0)))
    # xr[n, a, p, b, q*C_in + c] == xpad[n, 2a + p, 2b + q, c]  (pure reshape, no copy)
    xr = xpad.reshape(n, hp // 2, 2, wp // 2, 2 * c_in)

    # Tap-major weights with C_out padded to a lane-dense multiple of 128.
    cp = max(128, ((c_out + 127) // 128) * 128)
    w_t = jnp.transpose(weight, (2, 3, 1, 0)).reshape(9, c_in, c_out)  # (kh*kw, Cin, Cout)
    w_t = jnp.pad(w_t, ((0, 0), (0, 0), (0, cp - c_out))).astype(compute_dtype)
    b_p = jnp.pad(bias, (0, cp - c_out)).reshape(1, cp).astype(jnp.float32)

    out = pl.pallas_call(
        _conv3x3s2_kernel,
        out_shape=jax.ShapeDtypeStruct((n, ho, wo, cp), jnp.float32),
        grid_spec=pltpu.PrefetchScalarGridSpec(
            num_scalar_prefetch=0,
            grid=(n,),
            in_specs=[
                pl.BlockSpec((1, hp // 2, 2, wp // 2, 2 * c_in),
                             lambda i: (i, 0, 0, 0, 0)),
                pl.BlockSpec((9, c_in, cp), lambda i: (0, 0, 0)),
                pl.BlockSpec((1, cp), lambda i: (0, 0)),
            ],
            out_specs=pl.BlockSpec((1, ho, wo, cp), lambda i: (i, 0, 0, 0)),
        ),
        compiler_params=pltpu.CompilerParams(
            dimension_semantics=("parallel",)),
    )(xr, w_t, b_p)

    out = out[..., :c_out]                      # drop C_out lane padding
    return jnp.transpose(out, (0, 3, 1, 2))     # NHWC -> NCHW (module semantics)


if __name__ == "__main__":
    # Small shapes consistent with the module: batch=2, in_channels=4, spatial=16.
    N, C_IN, H, W = 2, 4, 16, 16
    C_OUT = 8

    key = jax.random.PRNGKey(0)
    k_w, k_b, k_x = jax.random.split(key, 3)

    # Deterministic PyTorch-style Conv2d init (uniform in +-1/sqrt(fan_in)).
    fan_in = C_IN * 3 * 3
    bound = 1.0 / math.sqrt(fan_in)
    weight = jax.random.uniform(k_w, (C_OUT, C_IN, 3, 3),
                                minval=-bound, maxval=bound, dtype=jnp.float32)
    bias = jax.random.uniform(k_b, (C_OUT,),
                              minval=-bound, maxval=bound, dtype=jnp.float32)
    x = jax.random.normal(k_x, (N, C_IN, H, W), dtype=jnp.float32)

    fwd = jax.jit(downsample_forward)
    y = jax.block_until_ready(fwd(x, weight, bias))

    # Reference computed on the same bf16-rounded operands (the kernel feeds bf16 to
    # the MXU with f32 accumulation), so the comparison stays tight.
    x_r = x.astype(jnp.bfloat16).astype(jnp.float32)
    w_r = weight.astype(jnp.bfloat16).astype(jnp.float32)
    ref = jax.lax.conv_general_dilated(
        x_r, w_r, window_strides=(2, 2), padding=((1, 1), (1, 1)),
        dimension_numbers=("NCHW", "OIHW", "NCHW"),
        precision=jax.lax.Precision.HIGHEST) + bias[None, :, None, None]

    assert y.shape == (N, C_OUT, H // 2, W // 2), y.shape
    max_err = float(jnp.max(jnp.abs(y - ref)))
    assert jnp.allclose(y, ref, atol=1e-4, rtol=1e-4), max_err

    print("KERNEL_OK")
</pallas_src>

<mosaic_0001>
module attributes {stable_mosaic.version = 11 : i64} {
  func.func @_conv3x3s2_kernel(%arg0: i32, %arg1: memref<1x9x2x9x8xf32, #tpu.memory_space<vmem>>, %arg2: memref<9x4x128xbf16, #tpu.memory_space<vmem>>, %arg3: memref<1x128xf32, #tpu.memory_space<vmem>>, %arg4: memref<1x8x8x128xf32, #tpu.memory_space<vmem>>) attributes {dimension_semantics = [#tpu.dimension_semantics<parallel>], iteration_bounds = array<i64: 2>, scalar_prefetch = 0 : i64, scratch_operands = 0 : i64, tpu.core_type = #tpu.core_type<tc>, window_params = [{transform_indices = @transform_0, window_bounds = array<i64: 1, 9, 2, 9, 8>}, {pipeline_mode = #tpu.pipeline_mode<synchronous>, transform_indices = @transform_1, window_bounds = array<i64: 9, 4, 128>}, {pipeline_mode = #tpu.pipeline_mode<synchronous>, transform_indices = @transform_2, window_bounds = array<i64: 1, 128>}, {transform_indices = @transform_3, window_bounds = array<i64: 1, 8, 8, 128>}]} {
    %cst = arith.constant 0.000000e+00 : f32
    %0 = vector.broadcast %cst : f32 to vector<64x128xf32>
    %c0 = arith.constant 0 : index
    %c0_0 = arith.constant 0 : index
    %c0_1 = arith.constant 0 : index
    %c0_2 = arith.constant 0 : index
    %c0_3 = arith.constant 0 : index
    %1 = vector.load %arg1[%c0, %c0_0, %c0_1, %c0_2, %c0_3] : memref<1x9x2x9x8xf32, #tpu.memory_space<vmem>>, vector<1x8x1x8x4xf32>
    %2 = vector.shape_cast %1 : vector<1x8x1x8x4xf32> to vector<8x8x4xf32>
    %3 = vector.shape_cast %2 : vector<8x8x4xf32> to vector<64x4xf32>
    %4 = arith.truncf %3 : vector<64x4xf32> to vector<64x4xbf16>
    %c0_4 = arith.constant 0 : index
    %c0_5 = arith.constant 0 : index
    %c0_6 = arith.constant 0 : index
    %5 = vector.load %arg2[%c0_4, %c0_5, %c0_6] : memref<9x4x128xbf16, #tpu.memory_space<vmem>>, vector<1x4x128xbf16>
    %6 = vector.shape_cast %5 : vector<1x4x128xbf16> to vector<4x128xbf16>
    %cst_7 = arith.constant dense<0.000000e+00> : vector<64x128xf32>
    %7 = tpu.matmul %4, %6, %cst_7 {dimension_numbers = #tpu.dot_dimension_numbers<[1], [0], [0], [1], [0, 0, 1, 1], [], []>} : vector<64x4xbf16>, vector<4x128xbf16>, vector<64x128xf32> -> vector<64x128xf32>
    %8 = arith.addf %0, %7 : vector<64x128xf32>
    %c0_8 = arith.constant 0 : index
    %c0_9 = arith.constant 0 : index
    %c0_10 = arith.constant 0 : index
    %c0_11 = arith.constant 0 : index
    %c4 = arith.constant 4 : index
    %9 = vector.load %arg1[%c0_8, %c0_9, %c0_10, %c0_11, %c4] : memref<1x9x2x9x8xf32, #tpu.memory_space<vmem>>, vector<1x8x1x8x4xf32>
    %10 = vector.shape_cast %9 : vector<1x8x1x8x4xf32> to vector<8x8x4xf32>
    %11 = vector.shape_cast %10 : vector<8x8x4xf32> to vector<64x4xf32>
    %12 = arith.truncf %11 : vector<64x4xf32> to vector<64x4xbf16>
    %c1 = arith.constant 1 : index
    %c0_12 = arith.constant 0 : index
    %c0_13 = arith.constant 0 : index
    %13 = vector.load %arg2[%c1, %c0_12, %c0_13] : memref<9x4x128xbf16, #tpu.memory_space<vmem>>, vector<1x4x128xbf16>
    %14 = vector.shape_cast %13 : vector<1x4x128xbf16> to vector<4x128xbf16>
    %cst_14 = arith.constant dense<0.000000e+00> : vector<64x128xf32>
    %15 = tpu.matmul %12, %14, %cst_14 {dimension_numbers = #tpu.dot_dimension_numbers<[1], [0], [0], [1], [0, 0, 1, 1], [], []>} : vector<64x4xbf16>, vector<4x128xbf16>, vector<64x128xf32> -> vector<64x128xf32>
    %16 = arith.addf %8, %15 : vector<64x128xf32>
    %c0_15 = arith.constant 0 : index
    %c0_16 = arith.constant 0 : index
    %c0_17 = arith.constant 0 : index
    %c1_18 = arith.constant 1 : index
    %c0_19 = arith.constant 0 : index
    %17 = vector.load %arg1[%c0_15, %c0_16, %c0_17, %c1_18, %c0_19] : memref<1x9x2x9x8xf32, #tpu.memory_space<vmem>>, vector<1x8x1x8x4xf32>
    %18 = vector.shape_cast %17 : vector<1x8x1x8x4xf32> to vector<8x8x4xf32>
    %19 = vector.shape_cast %18 : vector<8x8x4xf32> to vector<64x4xf32>
    %20 = arith.truncf %19 : vector<64x4xf32> to vector<64x4xbf16>
    %c2 = arith.constant 2 : index
    %c0_20 = arith.constant 0 : index
    %c0_21 = arith.constant 0 : index
    %21 = vector.load %arg2[%c2, %c0_20, %c0_21] : memref<9x4x128xbf16, #tpu.memory_space<vmem>>, vector<1x4x128xbf16>
    %22 = vector.shape_cast %21 : vector<1x4x128xbf16> to vector<4x128xbf16>
    %cst_22 = arith.constant dense<0.000000e+00> : vector<64x128xf32>
    %23 = tpu.matmul %20, %22, %cst_22 {dimension_numbers = #tpu.dot_dimension_numbers<[1], [0], [0], [1], [0, 0, 1, 1], [], []>} : vector<64x4xbf16>, vector<4x128xbf16>, vector<64x128xf32> -> vector<64x128xf32>
    %24 = arith.addf %16, %23 : vector<64x128xf32>
    %c0_23 = arith.constant 0 : index
    %c0_24 = arith.constant 0 : index
    %c1_25 = arith.constant 1 : index
    %c0_26 = arith.constant 0 : index
    %c0_27 = arith.constant 0 : index
    %25 = vector.load %arg1[%c0_23, %c0_24, %c1_25, %c0_26, %c0_27] : memref<1x9x2x9x8xf32, #tpu.memory_space<vmem>>, vector<1x8x1x8x4xf32>
    %26 = vector.shape_cast %25 : vector<1x8x1x8x4xf32> to vector<8x8x4xf32>
    %27 = vector.shape_cast %26 : vector<8x8x4xf32> to vector<64x4xf32>
    %28 = arith.truncf %27 : vector<64x4xf32> to vector<64x4xbf16>
    %c3 = arith.constant 3 : index
    %c0_28 = arith.constant 0 : index
    %c0_29 = arith.constant 0 : index
    %29 = vector.load %arg2[%c3, %c0_28, %c0_29] : memref<9x4x128xbf16, #tpu.memory_space<vmem>>, vector<1x4x128xbf16>
    %30 = vector.shape_cast %29 : vector<1x4x128xbf16> to vector<4x128xbf16>
    %cst_30 = arith.constant dense<0.000000e+00> : vector<64x128xf32>
    %31 = tpu.matmul %28, %30, %cst_30 {dimension_numbers = #tpu.dot_dimension_numbers<[1], [0], [0], [1], [0, 0, 1, 1], [], []>} : vector<64x4xbf16>, vector<4x128xbf16>, vector<64x128xf32> -> vector<64x128xf32>
    %32 = arith.addf %24, %31 : vector<64x128xf32>
    %c0_31 = arith.constant 0 : index
    %c0_32 = arith.constant 0 : index
    %c1_33 = arith.constant 1 : index
    %c0_34 = arith.constant 0 : index
    %c4_35 = arith.constant 4 : index
    %33 = vector.load %arg1[%c0_31, %c0_32, %c1_33, %c0_34, %c4_35] : memref<1x9x2x9x8xf32, #tpu.memory_space<vmem>>, vector<1x8x1x8x4xf32>
    %34 = vector.shape_cast %33 : vector<1x8x1x8x4xf32> to vector<8x8x4xf32>
    %35 = vector.shape_cast %34 : vector<8x8x4xf32> to vector<64x4xf32>
    %36 = arith.truncf %35 : vector<64x4xf32> to vector<64x4xbf16>
    %c4_36 = arith.constant 4 : index
    %c0_37 = arith.constant 0 : index
    %c0_38 = arith.constant 0 : index
    %37 = vector.load %arg2[%c4_36, %c0_37, %c0_38] : memref<9x4x128xbf16, #tpu.memory_space<vmem>>, vector<1x4x128xbf16>
    %38 = vector.shape_cast %37 : vector<1x4x128xbf16> to vector<4x128xbf16>
    %cst_39 = arith.constant dense<0.000000e+00> : vector<64x128xf32>
    %39 = tpu.matmul %36, %38, %cst_39 {dimension_numbers = #tpu.dot_dimension_numbers<[1], [0], [0], [1], [0, 0, 1, 1], [], []>} : vector<64x4xbf16>, vector<4x128xbf16>, vector<64x128xf32> -> vector<64x128xf32>
    %40 = arith.addf %32, %39 : vector<64x128xf32>
    %c0_40 = arith.constant 0 : index
    %c0_41 = arith.constant 0 : index
    %c1_42 = arith.constant 1 : index
    %c1_43 = arith.constant 1 : index
    %c0_44 = arith.constant 0 : index
    %41 = vector.load %arg1[%c0_40, %c0_41, %c1_42, %c1_43, %c0_44] : memref<1x9x2x9x8xf32, #tpu.memory_space<vmem>>, vector<1x8x1x8x4xf32>
    %42 = vector.shape_cast %41 : vector<1x8x1x8x4xf32> to vector<8x8x4xf32>
    %43 = vector.shape_cast %42 : vector<8x8x4xf32> to vector<64x4xf32>
    %44 = arith.truncf %43 : vector<64x4xf32> to vector<64x4xbf16>
    %c5 = arith.constant 5 : index
    %c0_45 = arith.constant 0 : index
    %c0_46 = arith.constant 0 : index
    %45 = vector.load %arg2[%c5, %c0_45, %c0_46] : memref<9x4x128xbf16, #tpu.memory_space<vmem>>, vector<1x4x128xbf16>
    %46 = vector.shape_cast %45 : vector<1x4x128xbf16> to vector<4x128xbf16>
    %cst_47 = arith.constant dense<0.000000e+00> : vector<64x128xf32>
    %47 = tpu.matmul %44, %46, %cst_47 {dimension_numbers = #tpu.dot_dimension_numbers<[1], [0], [0], [1], [0, 0, 1, 1], [], []>} : vector<64x4xbf16>, vector<4x128xbf16>, vector<64x128xf32> -> vector<64x128xf32>
    %48 = arith.addf %40, %47 : vector<64x128xf32>
    %c0_48 = arith.constant 0 : index
    %c1_49 = arith.constant 1 : index
    %c0_50 = arith.constant 0 : index
    %c0_51 = arith.constant 0 : index
    %c0_52 = arith.constant 0 : index
    %49 = vector.load %arg1[%c0_48, %c1_49, %c0_50, %c0_51, %c0_52] : memref<1x9x2x9x8xf32, #tpu.memory_space<vmem>>, vector<1x8x1x8x4xf32>
    %50 = vector.shape_cast %49 : vector<1x8x1x8x4xf32> to vector<8x8x4xf32>
    %51 = vector.shape_cast %50 : vector<8x8x4xf32> to vector<64x4xf32>
    %52 = arith.truncf %51 : vector<64x4xf32> to vector<64x4xbf16>
    %c6 = arith.constant 6 : index
    %c0_53 = arith.constant 0 : index
    %c0_54 = arith.constant 0 : index
    %53 = vector.load %arg2[%c6, %c0_53, %c0_54] : memref<9x4x128xbf16, #tpu.memory_space<vmem>>, vector<1x4x128xbf16>
    %54 = vector.shape_cast %53 : vector<1x4x128xbf16> to vector<4x128xbf16>
    %cst_55 = arith.constant dense<0.000000e+00> : vector<64x128xf32>
    %55 = tpu.matmul %52, %54, %cst_55 {dimension_numbers = #tpu.dot_dimension_numbers<[1], [0], [0], [1], [0, 0, 1, 1], [], []>} : vector<64x4xbf16>, vector<4x128xbf16>, vector<64x128xf32> -> vector<64x128xf32>
    %56 = arith.addf %48, %55 : vector<64x128xf32>
    %c0_56 = arith.constant 0 : index
    %c1_57 = arith.constant 1 : index
    %c0_58 = arith.constant 0 : index
    %c0_59 = arith.constant 0 : index
    %c4_60 = arith.constant 4 : index
    %57 = vector.load %arg1[%c0_56, %c1_57, %c0_58, %c0_59, %c4_60] : memref<1x9x2x9x8xf32, #tpu.memory_space<vmem>>, vector<1x8x1x8x4xf32>
    %58 = vector.shape_cast %57 : vector<1x8x1x8x4xf32> to vector<8x8x4xf32>
    %59 = vector.shape_cast %58 : vector<8x8x4xf32> to vector<64x4xf32>
    %60 = arith.truncf %59 : vector<64x4xf32> to vector<64x4xbf16>
    %c7 = arith.constant 7 : index
    %c0_61 = arith.constant 0 : index
    %c0_62 = arith.constant 0 : index
    %61 = vector.load %arg2[%c7, %c0_61, %c0_62] : memref<9x4x128xbf16, #tpu.memory_space<vmem>>, vector<1x4x128xbf16>
    %62 = vector.shape_cast %61 : vector<1x4x128xbf16> to vector<4x128xbf16>
    %cst_63 = arith.constant dense<0.000000e+00> : vector<64x128xf32>
    %63 = tpu.matmul %60, %62, %cst_63 {dimension_numbers = #tpu.dot_dimension_numbers<[1], [0], [0], [1], [0, 0, 1, 1], [], []>} : vector<64x4xbf16>, vector<4x128xbf16>, vector<64x128xf32> -> vector<64x128xf32>
    %64 = arith.addf %56, %63 : vector<64x128xf32>
    %c0_64 = arith.constant 0 : index
    %c1_65 = arith.constant 1 : index
    %c0_66 = arith.constant 0 : index
    %c1_67 = arith.constant 1 : index
    %c0_68 = arith.constant 0 : index
    %65 = vector.load %arg1[%c0_64, %c1_65, %c0_66, %c1_67, %c0_68] : memref<1x9x2x9x8xf32, #tpu.memory_space<vmem>>, vector<1x8x1x8x4xf32>
    %66 = vector.shape_cast %65 : vector<1x8x1x8x4xf32> to vector<8x8x4xf32>
    %67 = vector.shape_cast %66 : vector<8x8x4xf32> to vector<64x4xf32>
    %68 = arith.truncf %67 : vector<64x4xf32> to vector<64x4xbf16>
    %c8 = arith.constant 8 : index
    %c0_69 = arith.constant 0 : index
    %c0_70 = arith.constant 0 : index
    %69 = vector.load %arg2[%c8, %c0_69, %c0_70] : memref<9x4x128xbf16, #tpu.memory_space<vmem>>, vector<1x4x128xbf16>
    %70 = vector.shape_cast %69 : vector<1x4x128xbf16> to vector<4x128xbf16>
    %cst_71 = arith.constant dense<0.000000e+00> : vector<64x128xf32>
    %71 = tpu.matmul %68, %70, %cst_71 {dimension_numbers = #tpu.dot_dimension_numbers<[1], [0], [0], [1], [0, 0, 1, 1], [], []>} : vector<64x4xbf16>, vector<4x128xbf16>, vector<64x128xf32> -> vector<64x128xf32>
    %72 = arith.addf %64, %71 : vector<64x128xf32>
    %c0_72 = arith.constant 0 : index
    %c0_73 = arith.constant 0 : index
    %73 = vector.load %arg3[%c0_72, %c0_73] : memref<1x128xf32, #tpu.memory_space<vmem>>, vector<1x128xf32>
    %74 = vector.broadcast %73 : vector<1x128xf32> to vector<64x128xf32>
    %75 = arith.addf %72, %74 : vector<64x128xf32>
    %76 = vector.shape_cast %75 : vector<64x128xf32> to vector<8x8x128xf32>
    %c0_74 = arith.constant 0 : index
    %c0_75 = arith.constant 0 : index
    %c0_76 = arith.constant 0 : index
    %c0_77 = arith.constant 0 : index
    %77 = vector.load %arg4[%c0_74, %c0_75, %c0_76, %c0_77] : memref<1x8x8x128xf32, #tpu.memory_space<vmem>>, vector<1x8x8x128xf32>
    %78 = vector.shape_cast %77 : vector<1x8x8x128xf32> to vector<8x8x128xf32>
    %79 = vector.shape_cast %76 : vector<8x8x128xf32> to vector<1x8x8x128xf32>
    tpu.vector_store %arg4[%c0_74, %c0_75, %c0_76, %c0_77], %79 {strides = array<i32>} : memref<1x8x8x128xf32, #tpu.memory_space<vmem>>, vector<1x8x8x128xf32>,
    return
  }
  func.func @transform_0(%arg0: i32) -> (i32, i32, i32, i32, i32) {
    %c0_i32 = arith.constant 0 : i32
    %c0_i32_0 = arith.constant 0 : i32
    %c0_i32_1 = arith.constant 0 : i32
    %c0_i32_2 = arith.constant 0 : i32
    %c0_i32_3 = arith.constant 0 : i32
    return %arg0, %c0_i32, %c0_i32_0, %c0_i32_1, %c0_i32_2 : i32, i32, i32, i32, i32
  }
  func.func @transform_1(%arg0: i32) -> (i32, i32, i32) {
    %c0_i32 = arith.constant 0 : i32
    %c0_i32_0 = arith.constant 0 : i32
    %c0_i32_1 = arith.constant 0 : i32
    %c0_i32_2 = arith.constant 0 : i32
    return %c0_i32, %c0_i32_0, %c0_i32_1 : i32, i32, i32
  }
  func.func @transform_2(%arg0: i32) -> (i32, i32) {
    %c0_i32 = arith.constant 0 : i32
    %c0_i32_0 = arith.constant 0 : i32
    %c0_i32_1 = arith.constant 0 : i32
    return %c0_i32, %c0_i32_0 : i32, i32
  }
  func.func @transform_3(%arg0: i32) -> (i32, i32, i32, i32) {
    %c0_i32 = arith.constant 0 : i32
    %c0_i32_0 = arith.constant 0 : i32
    %c0_i32_1 = arith.constant 0 : i32
    %c0_i32_2 = arith.constant 0 : i32
    return %arg0, %c0_i32, %c0_i32_0, %c0_i32_1 : i32, i32, i32, i32
  }
}

</mosaic_0001>

<bundles_post_ra>
// kernel: downsample_forward.1
= control target key start
LH: loop header
LB: loop body
LE: loop exit
PB: predicated region body
PF: predicated region fallthrough
CT: control target
= control target key end

     0   :  { %s958_s12 = smov 0   ;;  %s1239_s0 = inlined_call_operand.vmem [shape: f32[2,9,2,9,8], index: 0, kind: input, shape index: {}]   ;;  %s1240_s1 = inlined_call_operand.vmem [shape: bf16[9,4,128], index: 1, kind: input, shape index: {}]   ;;  %s1241_s2 = inlined_call_operand.vmem [shape: f32[1,128], index: 2, kind: input, shape index: {}]   ;;  %s1242_s3 = inlined_call_operand.vmem [shape: f32[2,8,8,128], index: 3, kind: output, shape index: {}]  }
   0x1 LB: > { %s828_s13 = sadd.s32 4294967295, %s935_s12   ;;  %p832_p0 = scmp.ge.s32.totalorder %s935_s12, 1  ;;  %s935_s12 = sphi %s958_s12, %s13_s12  }
   0x2   : > { %p137_p1 = scmp.lt.s32.totalorder %s935_s12, 3 }
   0x4   : > { %p138_p2 = pnand %p832_p0, %p137_p1 }
   0x5   : > { %p161_p3 = scmp.lt.s32.totalorder (!%p138_p2), %s828_s13, 1  ;;  %s937_s20 = smov (!%p138_p2), 124  }
   0x6   : > { %141 = sbr.rel (%p138_p2) target bundleno = 417 (0x1a1), region = 32 }
   0xb   : > { %s1244_s13 = smov (!%p161_p3, %s828_s13), 1  ;;  %v836_v0 = vld [vmem:[%s1240_s1 + $0x2] sm:$0x3]  ;;  %vm212_vm0 = vcmask 1041408   ;;  %v845_v29 = vld [vmem:[%s1240_s1 + $0x4] sm:$0x3] }
   0xc   : > { %v214_v1 = vsel %vm212_vm0, %v836_v0, 0  ;;  %s918_s16 = smul.u32 288, %s1244_s13  ;;  %v316_v30 = vsel %vm212_vm0, %v845_v29, 0  ;;  %v858_v31 = vld [vmem:[%s1240_s1 + $0x6] sm:$0x3]  ;;  %vm199_vm1 = vcmask 31744  }
   0xd   : > { %915 = vmatpush.bf16.msra.mxu1 %v214_v1  ;;  %916 = vmatpush.bf16.msra.mxu2 %v214_v1  ;;  %v184_v32 = vld [vmem:[%s1240_s1] sm:$0x3]  ;;  %v383_v33 = vsel %vm212_vm0, %v858_v31, 0  ;;  %v863_v35 = vld [vmem:[%s1240_s1 + $0x8] sm:$0x3]  ;;  %s914_s10 = sshll.u32 %s1244_s13, 6 }
   0xe   : > { %223 = vmatpush.bf16.msra.mxu0 %v214_v1  ;;  %917 = vmatpush.bf16.msra.mxu3 %v214_v1  ;;  %s976_s19 = scalar_lea.vmem %s1239_s0, %s918_s16  ;;  %v258_v34 = vsel %vm212_vm0, %v184_v32, 0  ;;  %v449_v36 = vsel %vm212_vm0, %v863_v35, 0  ;;  %v889_v37 = vld [vmem:[%s1240_s1 + $0xc] sm:$0x3]  ;;  %v876_v38 = vld [vmem:[%s1240_s1 + $0xa] sm:$0x3]  ;;  %s1196_s17 = scalar_lea.vmem %s1242_s3, %s914_s10 }
   0xf   : > { %v176_v2 = vld [vmem:[%s976_s19 + $0x80] sm:$0xff]  ;;  %v850_v8 = vld [vmem:[%s976_s19 + $0x10] sm:$0xff]  ;;  %v582_v39 = vsel %vm212_vm0, %v889_v37, 0  ;;  %v515_v41 = vsel %vm212_vm0, %v876_v38, 0  ;;  %v894_v43 = vld [vmem:[%s1240_s1 + $0xe] sm:$0x3] }
  0x10   : > { %v177_v3 = vld [vmem:[%s976_s19 + $0xa0] sm:$0xff]  ;;  %v851_v9 = vld [vmem:[%s976_s19 + $0x30] sm:$0xff]  ;;  %v648_v45 = vsel %vm212_vm0, %v894_v43, 0 }
  0x11   : > { %v174_v4 = vld [vmem:[%s976_s19 + $0x40] sm:$0xff]  ;;  %v981_v5 = vpack.c.bf16 %v177_v3, %v176_v2  ;;  %v996_v12 = vpack.c.bf16 %v851_v9, %v850_v8  ;;  %v852_v16 = vld [vmem:[%s976_s19 + $0x50] sm:$0xff]  ;;  %325 = vmatpush.bf16.msrb.mxu2 %v316_v30  ;;  %267 = vmatpush.bf16.msrb.mxu1 %v258_v34 }
  0x12   : > { %v175_v6 = vld [vmem:[%s976_s19 + $0x60] sm:$0xff]  ;;  %v853_v17 = vld [vmem:[%s976_s19 + $0x70] sm:$0xff]  ;;  %392 = vmatpush.bf16.msrb.mxu3 %v383_v33  ;;  %458 = vmatpush.bf16.msrb.mxu0 %v449_v36 }
  0x13   : > { %v984_v7 = vpack.c.bf16 %v175_v6, %v174_v4  ;;  %195 = vrot.lane.b32.xlu0 %v981_v5, %s937_s20  ;;  %v178_v10 = vld [vmem:[%s976_s19 + $0xc0] sm:$0xff]  ;;  %428 = vrot.lane.b32.xlu2 %v996_v12, %s937_s20  ;;  %v1007_v19 = vpack.c.bf16 %v853_v17, %v852_v16  ;;  %v854_v20 = vld [vmem:[%s976_s19 + $0x90] sm:$0xff]  ;;  %v1030_v27 = vpack.c.bf16 %v176_v2, %v175_v6 }
  0x14   : > { %v994_v11 = vld [vmem:[%s976_s19 + $0xe0] sm:$0xff]  ;;  %v855_v21 = vld [vmem:[%s976_s19 + $0xb0] sm:$0xff]  ;;  %v1034_v28 = vpack.c.bf16 %v178_v10, %v177_v3 }
  0x15   : > { %193 = vrot.lane.b32.xlu1 %v984_v7, %s937_s20  ;;  %v172_v13 = vld [vmem:[%s976_s19] sm:$0xff]  ;;  %v1003_v15 = vpack.c.bf16 %v994_v11, %v178_v10  ;;  %v856_v22 = vld [vmem:[%s976_s19 + $0xd0] sm:$0xff]  ;;  %v1018_v24 = vpack.c.bf16 %v855_v21, %v854_v20 }
  0x16   : > { %v173_v14 = vld [vmem:[%s976_s19 + $0x20] sm:$0xff]  ;;  %v857_v23 = vld [vmem:[%s976_s19 + $0xf0] sm:$0xff] }
  0x17   : > { %v180_v18 = vpack.c.bf16 %v173_v14, %v172_v13  ;;  %v1020_v25 = vpack.c.bf16 %v857_v23, %v856_v22  ;;  %v1022_v26 = vpack.c.bf16 %v174_v4, %v173_v14  ;;  %v907_v44 = vld [vmem:[%s1240_s1 + $0x10] sm:$0x3]  ;;  %v289_v49 = vld [vmem:[%s976_s19 + $0x1] sm:$0xff] }
  0x18   : > { %v714_v47 = vsel %vm212_vm0, %v907_v44, 0  ;;  %v290_v50 = vld [vmem:[%s976_s19 + $0x21] sm:$0xff]  ;;  %v868_v3 = vld [vmem:[%s976_s19 + $0x11] sm:$0xff] }
  0x19   : > { %v888_v51 = vld [vmem:[%s976_s19 + $0x100] sm:$0xff]  ;;  %v297_v53 = vpack.c.bf16 %v290_v50, %v289_v49  ;;  %v869_v4 = vld [vmem:[%s976_s19 + $0x31] sm:$0xff] }
  0x1a   : > { %v1078_v52 = vpack.c.bf16 %v888_v51, %v994_v11  ;;  %v291_v55 = vld [vmem:[%s976_s19 + $0x41] sm:$0xff]  ;;  %v870_v8 = vld [vmem:[%s976_s19 + $0x51] sm:$0xff] }
  0x1b   : > { %197 = vrot.lane.b32.xlu0 %v1003_v15, %s937_s20  ;;  %430 = vrot.lane.b32.xlu2 %v1007_v19, %s937_s20  ;;  %v292_v56 = vld [vmem:[%s976_s19 + $0x61] sm:$0xff]  ;;  %v871_v9 = vld [vmem:[%s976_s19 + $0x71] sm:$0xff] }
  0x1c   : > { %v298_v57 = vpack.c.bf16 %v292_v56, %v291_v55  ;;  %v293_v59 = vld [vmem:[%s976_s19 + $0x81] sm:$0xff]  ;;  %v497_v10 = vpack.c.bf16 %v871_v9, %v870_v8  ;;  %v872_v13 = vld [vmem:[%s976_s19 + $0x91] sm:$0xff] }
  0x1d   : > { %191 = vrot.lane.b32.xlu1 %v180_v18, %s937_s20  ;;  %v294_v60 = vld [vmem:[%s976_s19 + $0xa1] sm:$0xff]  ;;  %v873_v14 = vld [vmem:[%s976_s19 + $0xb1] sm:$0xff] }
  0x1e   : > { %v299_v61 = vpack.c.bf16 %v294_v60, %v293_v59  ;;  %v295_v63 = vld [vmem:[%s976_s19 + $0xc1] sm:$0xff] }
  0x1f   : > { %v296_v0 = vld [vmem:[%s976_s19 + $0xe1] sm:$0xff]  ;;  %v697_v17 = vpack.c.bf16 %v295_v63, %v294_v60 }
  0x20   : > { %v300_v1 = vpack.c.bf16 %v296_v0, %v295_v63  ;;  %v906_v22 = vld [vmem:[%s976_s19 + $0x101] sm:$0xff] }
  0x23   : > { %432 = vrot.lane.b32.xlu0 %v1018_v24, %s937_s20  ;;  %627 = vrot.lane.b32.xlu2 %v1022_v26, %s937_s20 }
  0x25   : > { %434 = vrot.lane.b32.xlu1 %v1020_v25, %s937_s20 }
  0x2b   : > { %629 = vrot.lane.b32.xlu0 %v1030_v27, %s937_s20  ;;  %633 = vrot.lane.b32.xlu2 %v1078_v52, %s937_s20 }
  0x2d   : > { %631 = vrot.lane.b32.xlu1 %v1034_v28, %s937_s20 }
  0x6d   : > { %v429_v54 = vpop.permute.xlu2 %428 }
  0x75   : > { %v431_v58 = vpop.permute.xlu2 %430 }
  0x7d   : > { %v628_v6 = vpop.permute.xlu2 %627 }
  0x85   : > { %v196_v40 = vpop.permute.xlu0 %195 }
  0x86   : > { %839 = vmatmul.msk.bf16.vlgmr.msra.gmra.mxu2 %vm199_vm1, %v196_v40 }
  0x87   : > { %v194_v42 = vpop.permute.xlu1 %193  ;;  %591 = vmatpush.bf16.msra.mxu2 %v582_v39 }
  0x88   : > { %838 = vmatmul.msk.bf16.vlgmr.msra.gmra.mxu1 %vm199_vm1, %v194_v42 }
  0x89   : > { %524 = vmatpush.bf16.msra.mxu1 %v515_v41 }
  0x8d   : > { %v198_v46 = vpop.permute.xlu0 %197 }
  0x8e   : > { %840 = vmatmul.msk.bf16.vlgmr.msra.gmra.mxu3 %vm199_vm1, %v198_v46 }
  0x8f   : > { %v192_v48 = vpop.permute.xlu1 %191  ;;  %657 = vmatpush.bf16.msra.mxu3 %v648_v45 }
  0x90   : > { %837 = vmatmul.msk.bf16.vlgmr.msra.gmra.mxu0 %vm199_vm1, %v192_v48 }
  0x91   : > { %723 = vmatpush.bf16.msra.mxu0 %v714_v47 }
  0x95   : > { %v433_v62 = vpop.permute.xlu0 %432 }
  0x96   : > { %846 = vmatmul.msk.bf16.vlgmr.msrb.gmra.mxu2 %vm199_vm1, %v297_v53 }
  0x97   : > { %v435_v2 = vpop.permute.xlu1 %434 }
  0x98   : > { %841 = vmatmul.msk.bf16.vlgmr.msrb.gmra.mxu1 %vm199_vm1, %v180_v18  ;;  %v874_v18 = vld [vmem:[%s976_s19 + $0xd1] sm:$0xff] }
  0x9d   : > { %v630_v11 = vpop.permute.xlu0 %629 }
  0x9e   : > { %859 = vmatmul.msk.bf16.vlgmr.msrb.gmra.mxu3 %vm199_vm1, %v996_v12  ;;  %v696_v12 = vpack.c.bf16 %v293_v59, %v292_v56 }
  0x9f   : > { %v632_v16 = vpop.permute.xlu1 %631 }
  0xa0   : > { %864 = vmatmul.msk.bf16.vlgmr.msrb.gmra.mxu0 %vm199_vm1, %v429_v54 }
  0xa6   : > { %847 = vmatmul.msk.bf16.gmra.mxu2 %vm199_vm1, %v298_v57 }
  0xa8   : > { %842 = vmatmul.msk.bf16.gmra.mxu1 %vm199_vm1, %v984_v7  ;;  %v695_v7 = vpack.c.bf16 %v291_v55, %v290_v50 }
  0xae   : > { %860 = vmatmul.msk.bf16.gmra.mxu3 %vm199_vm1, %v1007_v19  ;;  %v875_v19 = vld [vmem:[%s976_s19 + $0xf1] sm:$0xff] }
  0xaf   : > { %v499_v20 = vpack.c.bf16 %v875_v19, %v874_v18 }
  0xb0   : > { %865 = vmatmul.msk.bf16.gmra.mxu0 %vm199_vm1, %v431_v58 }
  0xb6   : > { %848 = vmatmul.msk.bf16.gmra.mxu2 %vm199_vm1, %v299_v61 }
  0xb8   : > { %843 = vmatmul.msk.bf16.gmra.mxu1 %vm199_vm1, %v981_v5  ;;  %v496_v5 = vpack.c.bf16 %v869_v4, %v868_v3 }
  0xbe   : > { %861 = vmatmul.msk.bf16.gmra.mxu3 %vm199_vm1, %v1018_v24  ;;  %v634_v24 = vpop.permute.xlu2 %633 }
  0xc0   : > { %866 = vmatmul.msk.bf16.gmra.mxu0 %vm199_vm1, %v433_v62 }
  0xc6   : > { %849 = vmatmul.msk.bf16.gmra.mxu2 %vm199_vm1, %v300_v1 }
  0xc8   : > { %844 = vmatmul.msk.bf16.gmra.mxu1 %vm199_vm1, %v1003_v15  ;;  %v498_v15 = vpack.c.bf16 %v873_v14, %v872_v13 }
  0xce   : > { %862 = vmatmul.msk.bf16.gmra.mxu3 %vm199_vm1, %v1020_v25  ;;  %v698_v25 = vpack.c.bf16 %v906_v22, %v296_v0 }
  0xd0   : > { %867 = vmatmul.msk.bf16.gmra.mxu0 %vm199_vm1, %v435_v2 }
  0xd6   : > { %890 = vmatmul.msk.bf16.vlgmr.msra.gmra.mxu2 %vm199_vm1, %v1022_v26 }
  0xd8   : > { %877 = vmatmul.msk.bf16.vlgmr.msra.gmra.mxu1 %vm199_vm1, %v496_v5 }
  0xde   : > { %895 = vmatmul.msk.bf16.vlgmr.msra.gmra.mxu3 %vm199_vm1, %v628_v6 }
  0xe0   : > { %908 = vmatmul.msk.bf16.vlgmr.msra.gmra.mxu0 %vm199_vm1, %v695_v7 }
  0xe6   : > { %891 = vmatmul.msk.bf16.gmra.mxu2 %vm199_vm1, %v1030_v27 }
  0xe8   : > { %878 = vmatmul.msk.bf16.gmra.mxu1 %vm199_vm1, %v497_v10 }
  0xee   : > { %896 = vmatmul.msk.bf16.gmra.mxu3 %vm199_vm1, %v630_v11 }
  0xf0   : > { %909 = vmatmul.msk.bf16.gmra.mxu0 %vm199_vm1, %v696_v12 }
  0xf6   : > { %892 = vmatmul.msk.bf16.gmra.mxu2 %vm199_vm1, %v1034_v28 }
  0xf8   : > { %879 = vmatmul.msk.bf16.gmra.mxu1 %vm199_vm1, %v498_v15 }
  0xfe   : > { %897 = vmatmul.msk.bf16.gmra.mxu3 %vm199_vm1, %v632_v16  ;;  %v1190_v16 = vld [vmem:[%s1241_s2] ss:$0 sm:$0xff] }
 0x100   : > { %910 = vmatmul.msk.bf16.gmra.mxu0 %vm199_vm1, %v697_v17 }
 0x105   : > { %v1134_v21 = vpop.f32.mrf.mxu1 }
 0x106   : > { %893 = vmatmul.msk.bf16.gmra.mxu2 %vm199_vm1, %v1078_v52 }
 0x108   : > { %880 = vmatmul.msk.bf16.gmra.mxu1 %vm199_vm1, %v499_v20 }
 0x109   : > { %v1140_v23 = vpop.f32.mrf.mxu2 }
 0x10d   : > { %v225_v26 = vpop.f32.mrf.mxu0  ;;  %v1142_v27 = vpop.f32.mrf.mxu1 }
 0x10e   : > { %898 = vmatmul.msk.bf16.gmra.mxu3 %vm199_vm1, %v634_v24 }
 0x110   : > { %911 = vmatmul.msk.bf16.gmra.mxu0 %vm199_vm1, %v698_v25 }
 0x111   : > { %v1146_v28 = vpop.f32.mrf.mxu2  ;;  %v1148_v29 = vpop.f32.mrf.mxu3 }
 0x115   : > { %v227_v30 = vpop.f32.mrf.mxu0  ;;  %v269_v31 = vpop.f32.mrf.mxu1 }
 0x116   : > { %v270_v62 = vadd.f32 %v269_v31, %v225_v26 }
 0x119   : > { %v1150_v32 = vpop.f32.mrf.mxu3  ;;  %v327_v33 = vpop.f32.mrf.mxu2 }
 0x11a   : > { %v347_v1 = vadd.f32 %v327_v33, %v270_v62 }
 0x11d   : > { %v271_v34 = vpop.f32.mrf.mxu1  ;;  %v460_v35 = vpop.f32.mrf.mxu0 }
 0x11e   : > { %v272_v5 = vadd.f32 %v271_v34, %v227_v30 }
 0x121   : > { %v329_v36 = vpop.f32.mrf.mxu2  ;;  %v394_v37 = vpop.f32.mrf.mxu3 }
 0x122   : > { %v414_v2 = vadd.f32 %v394_v37, %v347_v1  ;;  %v348_v9 = vadd.f32 %v329_v36, %v272_v5 }
 0x124   : > { %v480_v6 = vadd.f32 %v460_v35, %v414_v2 }
 0x125   : > { %v274_v38 = vpop.f32.mrf.mxu1  ;;  %v462_v39 = vpop.f32.mrf.mxu0 }
 0x126   : > { %v275_v17 = vadd.f32 %v274_v38, %v1134_v21 }
 0x129   : > { %v332_v40 = vpop.f32.mrf.mxu2  ;;  %v396_v41 = vpop.f32.mrf.mxu3 }
 0x12a   : > { %v415_v11 = vadd.f32 %v396_v41, %v348_v9  ;;  %v349_v24 = vadd.f32 %v332_v40, %v275_v17 }
 0x12c   : > { %v481_v18 = vadd.f32 %v462_v39, %v415_v11 }
 0x12d   : > { %v276_v42 = vpop.f32.mrf.mxu1  ;;  %v465_v43 = vpop.f32.mrf.mxu0 }
 0x12e   : > { %v277_v35 = vadd.f32 %v276_v42, %v1142_v27 }
 0x131   : > { %v334_v44 = vpop.f32.mrf.mxu2  ;;  %v399_v45 = vpop.f32.mrf.mxu3 }
 0x132   : > { %v416_v30 = vadd.f32 %v399_v45, %v349_v24  ;;  %v350_v41 = vadd.f32 %v334_v44, %v277_v35 }
 0x134   : > { %v482_v36 = vadd.f32 %v465_v43, %v416_v30 }
 0x135   : > { %v1152_v46 = vpop.f32.mrf.mxu1  ;;  %v1154_v47 = vpop.f32.mrf.mxu0 }
 0x136   : > { %v280_v5 = vadd.f32 %v1152_v46, %v1140_v23 }
 0x139   : > { %v1156_v48 = vpop.f32.mrf.mxu2  ;;  %v401_v49 = vpop.f32.mrf.mxu3 }
 0x13a   : > { %v351_v44 = vadd.f32 %v1156_v48, %v280_v5 }
 0x13d   : > { %v1158_v50 = vpop.f32.mrf.mxu1  ;;  %v1160_v51 = vpop.f32.mrf.mxu0 }
 0x13e   : > { %v282_v23 = vadd.f32 %v1158_v50, %v1146_v28 }
 0x141   : > { %v1162_v52 = vpop.f32.mrf.mxu2  ;;  %v1164_v53 = vpop.f32.mrf.mxu3 }
 0x142   : > { %v352_v48 = vadd.f32 %v1162_v52, %v282_v23 }
 0x145   : > { %v1166_v54 = vpop.f32.mrf.mxu1  ;;  %v1168_v55 = vpop.f32.mrf.mxu0 }
 0x146   : > { %v285_v28 = vadd.f32 %v1166_v54, %v1148_v29 }
 0x149   : > { %v1170_v56 = vpop.f32.mrf.mxu2  ;;  %v1172_v57 = vpop.f32.mrf.mxu3 }
 0x14a   : > { %v353_v52 = vadd.f32 %v1170_v56, %v285_v28 }
 0x14d   : > { %v1174_v58 = vpop.f32.mrf.mxu1  ;;  %v1176_v59 = vpop.f32.mrf.mxu0 }
 0x14e   : > { %v287_v29 = vadd.f32 %v1174_v58, %v1150_v32 }
 0x151   : > { %v1178_v60 = vpop.f32.mrf.mxu2  ;;  %v1180_v61 = vpop.f32.mrf.mxu3 }
 0x152   : > { %v354_v56 = vadd.f32 %v1178_v60, %v287_v29 }
 0x155   : > { %v1182_v63 = vpop.f32.mrf.mxu0  ;;  %v526_v0 = vpop.f32.mrf.mxu1 }
 0x156   : > { %v546_v10 = vadd.f32 %v526_v0, %v480_v6  ;;  %v417_v0 = vadd.f32 %v401_v49, %v350_v41  ;;  %v418_v49 = vadd.f32 %v1164_v53, %v351_v44  ;;  %v419_v53 = vadd.f32 %v1172_v57, %v352_v48 }
 0x157   : > { %v420_v57 = vadd.f32 %v1180_v61, %v353_v52 }
 0x158   : > { %v483_v27 = vadd.f32 %v1154_v47, %v417_v0  ;;  %v484_v46 = vadd.f32 %v1160_v51, %v418_v49  ;;  %v485_v50 = vadd.f32 %v1168_v55, %v419_v53 }
 0x159   : > { %v1184_v3 = vpop.f32.mrf.mxu3  ;;  %v593_v4 = vpop.f32.mrf.mxu2  ;;  %v486_v54 = vadd.f32 %v1176_v59, %v420_v57 }
 0x15a   : > { %v613_v12 = vadd.f32 %v593_v4, %v546_v10  ;;  %v421_v61 = vadd.f32 %v1184_v3, %v354_v56 }
 0x15c   : > { %v487_v32 = vadd.f32 %v1182_v63, %v421_v61 }
 0x15d   : > { %v528_v7 = vpop.f32.mrf.mxu1  ;;  %v725_v8 = vpop.f32.mrf.mxu0 }
 0x15e   : > { %v547_v25 = vadd.f32 %v528_v7, %v481_v18 }
 0x161   : > { %v595_v13 = vpop.f32.mrf.mxu2  ;;  %v659_v14 = vpop.f32.mrf.mxu3 }
 0x162   : > { %v679_v15 = vadd.f32 %v659_v14, %v613_v12  ;;  %v614_v31 = vadd.f32 %v595_v13, %v547_v25 }
 0x164   : > { %v745_v19 = vadd.f32 %v725_v8, %v679_v15 }
 0x165   : > { %v531_v20 = vpop.f32.mrf.mxu1  ;;  %v727_v22 = vpop.f32.mrf.mxu0 }
 0x166   : > { %v757_v26 = vadd.f32 %v1190_v16, %v745_v19  ;;  %v548_v62 = vadd.f32 %v531_v20, %v482_v36 }
 0x168   : > { %765 = vst [vmem:[%s1196_s17] sm:$0xff] %v757_v26 }
 0x169   : > { %v598_v33 = vpop.f32.mrf.mxu2  ;;  %v661_v21 = vpop.f32.mrf.mxu3 }
 0x16a   : > { %v680_v34 = vadd.f32 %v661_v21, %v614_v31  ;;  %v615_v1 = vadd.f32 %v598_v33, %v548_v62 }
 0x16c   : > { %v746_v37 = vadd.f32 %v727_v22, %v680_v34 }
 0x16d   : > { %v533_v38 = vpop.f32.mrf.mxu1  ;;  %v730_v39 = vpop.f32.mrf.mxu0 }
 0x16e   : > { %v758_v40 = vadd.f32 %v1190_v16, %v746_v37  ;;  %v549_v7 = vadd.f32 %v533_v38, %v483_v27 }
 0x170   : > { %766 = vst [vmem:[%s1196_s17 + $0x8] sm:$0xff] %v758_v40 }
 0x171   : > { %v600_v45 = vpop.f32.mrf.mxu2  ;;  %v664_v2 = vpop.f32.mrf.mxu3 }
 0x172   : > { %v681_v4 = vadd.f32 %v664_v2, %v615_v1  ;;  %v616_v9 = vadd.f32 %v600_v45, %v549_v7 }
 0x174   : > { %v747_v42 = vadd.f32 %v730_v39, %v681_v4 }
 0x175   : > { %v732_v43 = vpop.f32.mrf.mxu0  ;;  %v536_v6 = vpop.f32.mrf.mxu1 }
 0x176   : > { %v759_v8 = vadd.f32 %v1190_v16, %v747_v42  ;;  %v550_v14 = vadd.f32 %v536_v6, %v484_v46 }
 0x178   : > { %767 = vst [vmem:[%s1196_s17 + $0x10] sm:$0xff] %v759_v8 }
 0x179   : > { %v603_v10 = vpop.f32.mrf.mxu2  ;;  %v666_v11 = vpop.f32.mrf.mxu3 }
 0x17a   : > { %v682_v12 = vadd.f32 %v666_v11, %v616_v9  ;;  %v617_v18 = vadd.f32 %v603_v10, %v550_v14 }
 0x17c   : > { %v748_v47 = vadd.f32 %v732_v43, %v682_v12 }
 0x17d   : > { %v735_v13 = vpop.f32.mrf.mxu0  ;;  %v538_v17 = vpop.f32.mrf.mxu1 }
 0x17e   : > { %v760_v15 = vadd.f32 %v1190_v16, %v748_v47  ;;  %v551_v24 = vadd.f32 %v538_v17, %v485_v50 }
 0x180   : > { %768 = vst [vmem:[%s1196_s17 + $0x18] sm:$0xff] %v760_v15 }
 0x181   : > { %v605_v19 = vpop.f32.mrf.mxu2  ;;  %v669_v20 = vpop.f32.mrf.mxu3 }
 0x182   : > { %v683_v22 = vadd.f32 %v669_v20, %v617_v18  ;;  %v618_v30 = vadd.f32 %v605_v19, %v551_v24 }
 0x184   : > { %v749_v51 = vadd.f32 %v735_v13, %v683_v22 }
 0x185   : > { %v737_v26 = vpop.f32.mrf.mxu0  ;;  %v541_v31 = vpop.f32.mrf.mxu1 }
 0x186   : > { %v761_v25 = vadd.f32 %v1190_v16, %v749_v51  ;;  %v552_v35 = vadd.f32 %v541_v31, %v486_v54 }
 0x188   : > { %769 = vst [vmem:[%s1196_s17 + $0x20] sm:$0xff] %v761_v25 }
 0x189   : > { %v671_v33 = vpop.f32.mrf.mxu3  ;;  %v608_v34 = vpop.f32.mrf.mxu2 }
 0x18a   : > { %v684_v21 = vadd.f32 %v671_v33, %v618_v30  ;;  %v619_v37 = vadd.f32 %v608_v34, %v552_v35 }
 0x18c   : > { %v750_v55 = vadd.f32 %v737_v26, %v684_v21 }
 0x18d   : > { %v740_v38 = vpop.f32.mrf.mxu0  ;;  %v543_v62 = vpop.f32.mrf.mxu1 }
 0x18e   : > { %v762_v36 = vadd.f32 %v1190_v16, %v750_v55  ;;  %v553_v40 = vadd.f32 %v543_v62, %v487_v32 }
 0x190   : > { %770 = vst [vmem:[%s1196_s17 + $0x28] sm:$0xff] %v762_v36 }
 0x191   : > { %v674_v39 = vpop.f32.mrf.mxu3  ;;  %v610_v59 = vpop.f32.mrf.mxu2 }
 0x192   : > { %v685_v41 = vadd.f32 %v674_v39, %v619_v37  ;;  %v620_v0 = vadd.f32 %v610_v59, %v553_v40 }
 0x194   : > { %v751_v58 = vadd.f32 %v740_v38, %v685_v41 }
 0x195   : > { %v742_v2 = vpop.f32.mrf.mxu0 }
 0x196   : > { %v763_v60 = vadd.f32 %v1190_v16, %v751_v58 }
 0x198   : > { %771 = vst [vmem:[%s1196_s17 + $0x30] sm:$0xff] %v763_v60 }
 0x199   : > { %v676_v1 = vpop.f32.mrf.mxu3 }
 0x19a   : > { %v686_v45 = vadd.f32 %v676_v1, %v620_v0 }
 0x19c   : > { %v752_v3 = vadd.f32 %v742_v2, %v686_v45 }
 0x19e   : > { %v764_v4 = vadd.f32 %v1190_v16, %v752_v3 }
 0x1a0   : > { %772 = vst [vmem:[%s1196_s17 + $0x38] sm:$0xff] %v764_v4 }
 0x1a1 PF: > { %s13_s12 = sadd.s32 1, %s935_s12  }
 0x1a2   : > { %p10_p4 = scmp.ge.s32.totalorder %s13_s12, 4  }
 0x1a4   :  { %12 = sbr.rel (!%p10_p4) target bundleno = 1 (0x1), region = 72 }

</bundles_post_ra>
